<compile_context>
chip_gen: v5e
topology: v5e:2x2
jax: 0.10.0
libtpu: 0.0.40
codegen_flags: <defaults>
</compile_context>

<pallas_src>
import functools

import jax
import jax.numpy as jnp
from jax.experimental import pallas as pl
from jax.experimental.pallas import tpu as pltpu


def _layernorm_kernel(x_ref, g_ref, b_ref, o_ref, *, eps, n_feat):
    x = x_ref[...].astype(jnp.float32)                       # (Rt, D)

    # mean over the feature axis
    mean = jnp.sum(x, axis=-1, keepdims=True) * (1.0 / n_feat)
    xc = x - mean

    # torch.Tensor.std default: unbiased (divide by N-1); centered two-pass for stability
    denom = max(n_feat - 1, 1)
    var = jnp.sum(xc * xc, axis=-1, keepdims=True) * (1.0 / denom)
    std = jnp.sqrt(var)

    # eps added to std (matches the PyTorch code); divide on the EUP slot
    inv = pl.reciprocal(std + eps, approx=True)               # (Rt, 1)
    out = g_ref[...] * (xc * inv) + b_ref[...]                # (1,D) params broadcast over rows
    o_ref[...] = out.astype(o_ref.dtype)


def _round_up(v, m):
    return ((v + m - 1) // m) * m


def _pick_rows_per_block(total_rows, feat, in_itemsize, byte_budget=3 << 20):
    """Rows per block sized by bytes (f32 compute footprint), multiple of 8, >=2 blocks."""
    if total_rows <= 8:
        return total_rows                      # block rows == full array dim (tiny input)

    # Budget on the f32 footprint: the in-kernel upcast temp exists even for bf16 input.
    bytes_per_row = feat * max(in_itemsize, 4)
    rows = max(8, (byte_budget // max(bytes_per_row, 1)) // 8 * 8)

    # Keep at least 2 grid steps so the "parallel" axis can feed both v7x TensorCores.
    half = _round_up((total_rows + 1) // 2, 8)
    rows = min(rows, half)

    # Never exceed the (sublane-rounded) array extent.
    rows = min(rows, _round_up(total_rows, 8))
    return max(8, rows)


def _vmem_limit_bytes(rows_per_block, feat, in_itemsize):
    """Deliberate scoped-VMEM limit: DMA double-buffers + in-kernel f32 temps + headroom."""
    blk_io = rows_per_block * feat * in_itemsize
    blk_f32 = rows_per_block * feat * 4
    est = 2 * blk_io + 2 * blk_io          # double-buffered input + output windows
    est += 3 * blk_f32                     # f32 upcast / centered / scaled temporaries
    est += 4 * feat * 4                    # gamma/beta (1, D) f32, double-buffered
    est = int(est * 1.25) + (4 << 20)      # headroom
    # <= 64 MiB keeps the same setting valid on v7x physical VMEM; >= 32 MiB lifts
    # the default scoped limits on v5e (16 MiB) / v6e / v7x (32 MiB) when needed.
    return max(32 << 20, min(est, 64 << 20))


def layer_norm(x, a_2, b_2, *, eps=1e-6):
    """Pallas implementation of LayerNorm.forward over the last axis of x."""
    orig_shape = x.shape
    D = orig_shape[-1]
    total_rows = 1
    for s in orig_shape[:-1]:
        total_rows *= s

    x2d = x.reshape(total_rows, D)
    g2d = a_2.reshape(1, D).astype(jnp.float32)
    b2d = b_2.reshape(1, D).astype(jnp.float32)

    in_itemsize = jnp.dtype(x.dtype).itemsize
    rows_per_block = _pick_rows_per_block(total_rows, D, in_itemsize)
    num_blocks = pl.cdiv(total_rows, rows_per_block)
    vmem_limit = _vmem_limit_bytes(rows_per_block, D, in_itemsize)

    kernel = functools.partial(_layernorm_kernel, eps=float(eps), n_feat=D)

    out2d = pl.pallas_call(
        kernel,
        out_shape=jax.ShapeDtypeStruct((total_rows, D), x.dtype),
        grid_spec=pltpu.PrefetchScalarGridSpec(
            num_scalar_prefetch=0,
            grid=(num_blocks,),
            in_specs=[
                pl.BlockSpec((rows_per_block, D), lambda i: (i, 0)),  # x row slab
                pl.BlockSpec((1, D), lambda i: (0, 0)),               # gamma (resident)
                pl.BlockSpec((1, D), lambda i: (0, 0)),               # beta  (resident)
            ],
            out_specs=pl.BlockSpec((rows_per_block, D), lambda i: (i, 0)),
        ),
        compiler_params=pltpu.CompilerParams(
            dimension_semantics=("parallel",),
            vmem_limit_bytes=vmem_limit,
        ),
    )(x2d, g2d, b2d)

    return out2d.reshape(orig_shape)


def _reference_layer_norm(x, a_2, b_2, *, eps=1e-6):
    """Pure-JAX mirror of the PyTorch module (unbiased std, eps added to std)."""
    mean = jnp.mean(x, axis=-1, keepdims=True)
    std = jnp.std(x, axis=-1, keepdims=True, ddof=1)  # unbiased, like torch default
    return a_2 * (x - mean) / (std + eps) + b_2


if __name__ == "__main__":
    key0 = jax.random.PRNGKey(0)
    kx, kg, kb, kx2 = jax.random.split(key0, 4)

    B, S, D = 2, 8, 32
    x = jax.random.normal(kx, (B, S, D), dtype=jnp.float32)
    # Module initializes a_2=ones, b_2=zeros; use non-trivial values so the affine
    # part is actually exercised.
    a_2 = 1.0 + 0.1 * jax.random.normal(kg, (D,), dtype=jnp.float32)
    b_2 = 0.1 * jax.random.normal(kb, (D,), dtype=jnp.float32)

    out = layer_norm(x, a_2, b_2, eps=1e-6)
    out = jax.block_until_ready(out)
    ref = _reference_layer_norm(x, a_2, b_2, eps=1e-6)
    assert out.shape == (B, S, D)
    # Tolerance accounts for the EUP approximate reciprocal (~1e-3 relative worst case);
    # still tight enough to catch any real semantic bug (e.g. wrong ddof ~1.6% shift).
    assert jnp.allclose(out, ref, atol=5e-3, rtol=5e-3), "Pallas LayerNorm mismatch vs reference"

    # Ragged row count (15 rows, not a multiple of the 8-row block): exercises the
    # pl.cdiv grid + masked partial last block path.
    x_odd = jax.random.normal(kx2, (3, 5, D), dtype=jnp.float32)
    out_odd = jax.block_until_ready(layer_norm(x_odd, a_2, b_2, eps=1e-6))
    ref_odd = _reference_layer_norm(x_odd, a_2, b_2, eps=1e-6)
    assert out_odd.shape == (3, 5, D)
    assert jnp.allclose(out_odd, ref_odd, atol=5e-3, rtol=5e-3), "Pallas LayerNorm mismatch (ragged rows)"

    print("KERNEL_OK")
</pallas_src>

<mosaic_0001>
module attributes {stable_mosaic.version = 11 : i64} {
  func.func @_layernorm_kernel(%arg0: i32, %arg1: memref<8x32xf32, #tpu.memory_space<vmem>>, %arg2: memref<1x32xf32, #tpu.memory_space<vmem>>, %arg3: memref<1x32xf32, #tpu.memory_space<vmem>>, %arg4: memref<8x32xf32, #tpu.memory_space<vmem>>) attributes {dimension_semantics = [#tpu.dimension_semantics<parallel>], iteration_bounds = array<i64: 2>, scalar_prefetch = 0 : i64, scratch_operands = 0 : i64, tpu.core_type = #tpu.core_type<tc>, window_params = [{transform_indices = @transform_0, window_bounds = array<i64: 8, 32>}, {pipeline_mode = #tpu.pipeline_mode<synchronous>, transform_indices = @transform_1, window_bounds = array<i64: 1, 32>}, {pipeline_mode = #tpu.pipeline_mode<synchronous>, transform_indices = @transform_2, window_bounds = array<i64: 1, 32>}, {transform_indices = @transform_3, window_bounds = array<i64: 8, 32>}]} {
    %c0 = arith.constant 0 : index
    %c0_0 = arith.constant 0 : index
    %0 = vector.load %arg1[%c0, %c0_0] : memref<8x32xf32, #tpu.memory_space<vmem>>, vector<8x32xf32>
    %cst = arith.constant dense<0.000000e+00> : vector<8xf32>
    %1 = vector.multi_reduction <add>, %0, %cst [1] : vector<8x32xf32> to vector<8xf32>
    %2 = vector.shape_cast %1 : vector<8xf32> to vector<8x1xf32>
    %cst_1 = arith.constant 3.125000e-02 : f32
    %3 = vector.broadcast %cst_1 : f32 to vector<8x1xf32>
    %4 = arith.mulf %2, %3 : vector<8x1xf32>
    %5 = vector.broadcast %4 : vector<8x1xf32> to vector<8x32xf32>
    %6 = arith.subf %0, %5 : vector<8x32xf32>
    %7 = arith.mulf %6, %6 : vector<8x32xf32>
    %cst_2 = arith.constant dense<0.000000e+00> : vector<8xf32>
    %8 = vector.multi_reduction <add>, %7, %cst_2 [1] : vector<8x32xf32> to vector<8xf32>
    %9 = vector.shape_cast %8 : vector<8xf32> to vector<8x1xf32>
    %cst_3 = arith.constant 0.0322580636 : f32
    %10 = vector.broadcast %cst_3 : f32 to vector<8x1xf32>
    %11 = arith.mulf %9, %10 : vector<8x1xf32>
    %12 = math.sqrt %11 : vector<8x1xf32>
    %cst_4 = arith.constant 9.99999997E-7 : f32
    %13 = vector.broadcast %cst_4 : f32 to vector<8x1xf32>
    %14 = arith.addf %12, %13 : vector<8x1xf32>
    %15 = tpu.reciprocal %14 {approx = true} : vector<8x1xf32> -> vector<8x1xf32>
    %c0_5 = arith.constant 0 : index
    %c0_6 = arith.constant 0 : index
    %16 = vector.load %arg2[%c0_5, %c0_6] : memref<1x32xf32, #tpu.memory_space<vmem>>, vector<1x32xf32>
    %17 = vector.broadcast %15 : vector<8x1xf32> to vector<8x32xf32>
    %18 = arith.mulf %6, %17 : vector<8x32xf32>
    %19 = vector.broadcast %16 : vector<1x32xf32> to vector<8x32xf32>
    %20 = arith.mulf %19, %18 : vector<8x32xf32>
    %c0_7 = arith.constant 0 : index
    %c0_8 = arith.constant 0 : index
    %21 = vector.load %arg3[%c0_7, %c0_8] : memref<1x32xf32, #tpu.memory_space<vmem>>, vector<1x32xf32>
    %22 = vector.broadcast %21 : vector<1x32xf32> to vector<8x32xf32>
    %23 = arith.addf %20, %22 : vector<8x32xf32>
    %c0_9 = arith.constant 0 : index
    %c0_10 = arith.constant 0 : index
    %24 = vector.load %arg4[%c0_9, %c0_10] : memref<8x32xf32, #tpu.memory_space<vmem>>, vector<8x32xf32>
    tpu.vector_store %arg4[%c0_9, %c0_10], %23 {strides = array<i32>} : memref<8x32xf32, #tpu.memory_space<vmem>>, vector<8x32xf32>,
    return
  }
  func.func @transform_0(%arg0: i32) -> (i32, i32) {
    %c0_i32 = arith.constant 0 : i32
    %c0_i32_0 = arith.constant 0 : i32
    return %arg0, %c0_i32 : i32, i32
  }
  func.func @transform_1(%arg0: i32) -> (i32, i32) {
    %c0_i32 = arith.constant 0 : i32
    %c0_i32_0 = arith.constant 0 : i32
    %c0_i32_1 = arith.constant 0 : i32
    return %c0_i32, %c0_i32_0 : i32, i32
  }
  func.func @transform_2(%arg0: i32) -> (i32, i32) {
    %c0_i32 = arith.constant 0 : i32
    %c0_i32_0 = arith.constant 0 : i32
    %c0_i32_1 = arith.constant 0 : i32
    return %c0_i32, %c0_i32_0 : i32, i32
  }
  func.func @transform_3(%arg0: i32) -> (i32, i32) {
    %c0_i32 = arith.constant 0 : i32
    %c0_i32_0 = arith.constant 0 : i32
    return %arg0, %c0_i32 : i32, i32
  }
}

</mosaic_0001>

<bundles_post_ra>
// kernel: tpu_custom_call.1
= control target key start
LH: loop header
LB: loop body
LE: loop exit
PB: predicated region body
PF: predicated region fallthrough
CT: control target
= control target key end

     0   :  { %8 = vsyncpa [#allocation3], 0  ;;  %s715_s0 = inlined_call_operand.hbm [shape: f32[16,32], index: 0, kind: input, shape index: {}]   ;;  %s716_s1 = inlined_call_operand.hbm [shape: f32[1,32], index: 1, kind: input, shape index: {}]   ;;  %s717_s2 = inlined_call_operand.vmem [shape: f32[1,32], index: 2, kind: input, shape index: {}]   ;;  %s718_s3 = inlined_call_operand.hbm [shape: f32[16,32], index: 3, kind: output, shape index: {}]  }
   0x1   :  { %10 = vsyncpa [#allocation3 + $0x1], 0 }
   0x2   :  { %11 = vsyncpa [#allocation6], 0 }
   0x3   :  { %12 = vsyncpa [#allocation4], 0 }
   0x4   :  { %14 = vsyncpa [#allocation4 + $0x1], 0  ;;  %s567_s12 = smov 0   ;;  %s569_s13 = smov 0  }
   0x5   :  { %s571_s14 = smov 0   ;;  %s573_s15 = smov 0  }
   0x6 LB: > { %s588_s16 = sadd.s32 4294967295, %s544_s15   ;;  %s337_s17 = sadd.s32 4294967294, %s544_s15   ;;  %s544_s15 = sphi %s573_s15, %s728_s15   ;;  %s540_s14 = sphi %s571_s14, %s727_s14   ;;  %s536_s13 = sphi %s569_s13, %s726_s13   ;;  %s532_s12 = sphi %s567_s12, %s725_s12  }
   0x7   : > { %p40_p0 = scmp.ne.s32.totalorder %s536_s13, %s532_s12  ;;  %p41_p1 = scmp.eq.s32.totalorder %s588_s16, 0 }
   0x8   : > { %p106_p2 = scmp.eq.s32.totalorder %s588_s16, 1  ;;  %p112_p3 = scmp.eq.s32.totalorder %s337_s17, 1 }
   0x9   : > { %p597_p4 = por %p41_p1, %p40_p0  ;;  %p338_p5 = scmp.ge.s32.totalorder %s544_s15, 1 }
   0xa   : > { %p602_p6 = por %p112_p3, %p40_p0  ;;  %p119_p7 = scmp.lt.s32.totalorder %s544_s15, 3 }
   0xb   : > { %s131_s22 = sshll.u32 %s716_s1, 4  ;;  %s546_s24 = smov [#allocation5]   ;;  %s132_s22 = int_to_ptr.hbm [resolvable:$true] %s131_s22 }
   0xc   : > { %p610_p8 = pnand %p338_p5, %p119_p7  ;;  %s133_s25 = sshll.u32 %s546_s24, 4  ;;  %s134_s25 = int_to_ptr.vmem [resolvable:$true] %s133_s25 }
   0xd   : > { %s620_s26 = sadd.s32 1, %s544_s15   ;;  %s27_s27 = sadd.s32 1, %s540_s14 }
   0xe   : > { %p359_p10 = pneg %p610_p8  ;;  %s24_s28 = ssub.s32 %s544_s15, %s620_s26 }
   0xf   : > { %p25_p12 = scmp.eq.s32.totalorder %s24_s28, 0  ;;  %p34_p13 = scmp.ne.s32.totalorder %s540_s14, %s536_s13 }
  0x10   : > { %p360_p11 = pnand %p359_p10, %p41_p1  ;;  %p35_p0 = scmp.eq.s32.totalorder %s544_s15, 0 }
  0x11   : > { %s629_s29 = scalar_select %p25_p12, %s540_s14, %s27_s27  }
  0x12   : > { %362 = dma.hbm_to_vmem [thread:$0]  (!%p360_p11), %s132_s22, 16, %s134_s25, [#allocation6]  }
  0x13   : > { %p633_p3 = por %p106_p2, %p34_p13  ;;  %p372_p5 = scmp.lt.s32.totalorder %s544_s15, 2 }
  0x14   : > { %s147_s4 = sand.u32 1, %s540_s14   ;;  %s342_s5 = sshll.u32 %s544_s15, 3 }
  0x15   : > { %p36_p7 = por %p35_p0, %p34_p13  ;;  %s341_s6 = sshll.u32 %s147_s4, 3 }
  0x16   : > { %s155_s9 = scalar_lea.hbm %s715_s0, %s342_s5  ;;  %s151_s11 = scalar_lea.vmem [#allocation2], %s341_s6 }
  0x17   : > { %s157_s10 = sshll.u32 %s155_s9, 4  ;;  %s159_s17 = sshll.u32 %s151_s11, 4  ;;  %s158_s10 = int_to_ptr.hbm [resolvable:$true] %s157_s10  ;;  %s160_s17 = int_to_ptr.vmem [resolvable:$true] %s159_s17 }
  0x18   : > { %p643_p10 = pnand %p372_p5, %p36_p7  ;;  %s148_s21 = scalar_lea.sflag [#allocation3], %s147_s4 }
  0x19   : > { %s444_s22 = sshra.s32 %s158_s10, 4  ;;  %s451_s28 = scalar_lea.hbm %s715_s0, 16  ;;  %s445_s22 = int_to_ptr.hbm [resolvable:$true] %s444_s22 }
  0x1a   : > { %s446_s24 = scalar_lea.hbm %s445_s22, 8  ;;  %p448_p11 = pneg %p643_p10 }
  0x1b   : > { %p447_p2 = scmp.ne.s32.totalorder %s445_s22, %s446_s24  ;;  %p452_p0 = scmp.lt.s32.totalorder %s445_s22, %s715_s0 }
  0x1c   : > { %p453_p5 = scmp.lt.s32.totalorder %s451_s28, %s446_s24 }
  0x1d   : > { %p449_p12 = pnand %p448_p11, %p447_p2 }
  0x1e   : > { %p454_p7 = por %p453_p5, %p452_p0 }
  0x1f   : > { %p450_p13 = pneg %p449_p12 }
  0x21   : > { %p455_p9 = pnand %p454_p7, %p450_p13 }
  0x23   : > { %458 = shalt.err (!%p455_p9)
}
  0x24   : > { %366 = dma.hbm_to_vmem [thread:$0]  (!%p643_p10), %s158_s10, 128, %s160_s17, %s148_s21  }
  0x25   : > { %168 = sbr.rel (%p610_p8) target bundleno = 327 (0x147), region = 32  ;;  %s660_s4 = sand.u32 (!%p610_p8), 1, %s536_s13  }
  0x26   : > { %s344_s7 = sshll.u32 (!%p610_p8), %s660_s4, 3  ;;  %s171_s8 = scalar_lea.sflag (!%p610_p8), [#allocation3], %s660_s4 }
  0x27   : > { %s174_s9 = scalar_lea.vmem (!%p610_p8), [#allocation2], %s344_s7 }
  0x2a   : > { %519 = dma.done.wait (%p597_p4), %s171_s8, 128  }
  0x2b   : > { %521 = vsyncadd (%p597_p4), %s171_s8, 4294967168 }
  0x2c   : > { %523 = dma.done.wait (%p41_p1), [#allocation6], 16  }
  0x2d   : > { %525 = vsyncadd (%p41_p1), [#allocation6], 4294967280  ;;  %vm204_vm0 = vcmask 261120   ;;  %v203_v0 = vld [vmem:[%s174_s9] sm:$0xff]  ;;  %s348_s18 = sshll.u32 %s588_s16, 3  ;;  %s202_s21 = scalar_lea.vmem [#allocation7], %s344_s7 }
  0x2e   : > { %v205_v1 = vsel %vm204_vm0, %v203_v0, 0.0  ;;  %v408_v20 = vld [vmem:[#allocation5] ss:$0 sm:$0xff]  ;;  %s252_s11 = scalar_lea.hbm %s718_s3, %s348_s18  ;;  %v409_v23 = vld [vmem:[%s717_s2] ss:$0 sm:$0xff]  ;;  %s254_s22 = sshll.u32 %s202_s21, 4  ;;  %s255_s22 = int_to_ptr.vmem [resolvable:$true] %s254_s22 }
  0x2f   : > { %206 = vadd.xlane.f32.xlu0 %v205_v1  ;;  %s256_s24 = sshll.u32 %s252_s11, 4  ;;  %s242_s16 = scalar_lea.sflag [#allocation4], %s660_s4  ;;  %s257_s24 = int_to_ptr.hbm [resolvable:$true] %s256_s24 }
  0x30   : > { %s488_s25 = sshra.s32 %s257_s24, 4  ;;  %s494_s6 = scalar_lea.hbm %s718_s3, 16  ;;  %s489_s25 = int_to_ptr.hbm [resolvable:$true] %s488_s25 }
  0x31   : > { %s490_s27 = scalar_lea.hbm %s489_s25, 8  ;;  %p495_p9 = scmp.lt.s32.totalorder %s489_s25, %s718_s3 }
  0x32   : > { %p491_p1 = scmp.ne.s32.totalorder %s489_s25, %s490_s27  ;;  %p496_p10 = scmp.lt.s32.totalorder %s494_s6, %s490_s27 }
  0x34   : > { %p492_p4 = pnand %p491_p1, %p633_p3  ;;  %p497_p2 = por %p496_p10, %p495_p9 }
  0x36   : > { %p493_p8 = pneg %p492_p4 }
  0x38   : > { %p498_p11 = pnand %p497_p2, %p493_p8 }
  0xa2   : > { %v207_v2 = vpop.xlane.xlu0 %206 }
  0xa3   : > { %v208_v3 = vmul.f32 0.03125, %v207_v2 }
  0xa5   : > { %v209_v4 = vsub.f32 %v203_v0, %v208_v3 }
  0xa7   : > { %v210_v5 = vmul.f32 %v209_v4, %v209_v4 }
  0xa9   : > { %v211_v6 = vsel %vm204_vm0, %v210_v5, 0.0 }
  0xaa   : > { %212 = vadd.xlane.f32.xlu0 %v211_v6 }
 0x11d   : > { %v213_v7 = vpop.xlane.xlu0 %212 }
 0x11e   : > { %v214_v8 = vmul.f32 0.032258064, %v213_v7 }
 0x120   : > { %410 = vrsqrt.f32 %v214_v8  ;;  %vm222_vm1 = vcmp.eq.f32.partialorder %v214_v8, inf  ;;  %v225_v16 = vand.u32 2147483648, %v214_v8  ;;  %vm224_vm2 = vcmp.eq.f32.partialorder %v214_v8, 0.0 }
 0x126   : > { %v411_v9 = vpop.eup %410 }
 0x127   : > { %v216_v10 = vmul.f32 %v411_v9, %v214_v8 }
 0x129   : > { %v217_v11 = vmul.f32 %v411_v9, %v216_v10 }
 0x12b   : > { %v218_v12 = vmul.f32 0.5, %v217_v11 }
 0x12d   : > { %v219_v13 = vsub.f32 1.5, %v218_v12 }
 0x12f   : > { %v220_v14 = vmul.f32 %v411_v9, %v219_v13 }
 0x131   : > { %v221_v15 = vmul.f32 %v220_v14, %v214_v8 }
 0x133   : > { %v223_v17 = vsel %vm222_vm1, %v214_v8, %v221_v15 }
 0x134   : > { %v226_v18 = vsel %vm224_vm2, %v225_v16, %v223_v17 }
 0x135   : > { %v227_v19 = vadd.f32 1e-06, %v226_v18 }
 0x137   : > { %412 = vrcp.f32 %v227_v19 }
 0x13d   : > { %v413_v21 = vpop.eup %412 }
 0x13e   : > { %v230_v22 = vmul.f32 %v413_v21, %v209_v4 }
 0x140   : > { %v234_v24 = vmul.f32 %v408_v20, %v230_v22 }
 0x142   : > { %v239_v25 = vadd.f32 %v409_v23, %v234_v24 }
 0x144   : > { %240 = vst.msk [vmem:[%s202_s21] sm:$0xff] %vm204_vm0, %v239_v25 }
 0x145   : > { %501 = shalt.err (!%p498_p11)
}
 0x146   : > { %357 = dma.vmem_to_hbm [thread:$0]  (%p633_p3), %s255_s22, 128, %s257_s24, %s242_s16  }
 0x147 PF: > { %s268_s4 = sand.u32 1, %s532_s12   ;;  %p724_p12 = scmp.ge.s32.totalorder %s544_s15, 2 }
 0x148   : > { %s269_s9 = scalar_lea.sflag [#allocation4], %s268_s4 }
 0x149   : > { %p368_p13 = pnand %p724_p12, %p602_p6 }
 0x14b   : > { %p369_p0 = pneg %p368_p13 }
 0x14d   : > { %527 = dma.done.wait (%p369_p0), %s269_s9, 128  }
 0x14e   : > { %529 = vsyncadd (%p369_p0), %s269_s9, 4294967168  ;;  %p17_p5 = scmp.ge.s32.totalorder %s620_s26, 4   ;;  %s725_s12 = smov %s536_s13 }
 0x14f   : > { %s726_s13 = smov %s540_s14  ;;  %s727_s14 = smov %s629_s29 }
 0x150   : > { %s728_s15 = smov %s620_s26  ;;  %19 = sbr.rel (!%p17_p5) target bundleno = 6 (0x6), region = 81 }
 0x155   :  { %275 = vsyncpa [#allocation3], 1 }
 0x156   :  { %277 = vsyncpa [#allocation3 + $0x1], 1 }
 0x157   :  { %278 = vsyncpa [#allocation6], 1 }
 0x158   :  { %279 = vsyncpa [#allocation4], 1 }
 0x159   :  { %281 = vsyncpa [#allocation4 + $0x1], 1 }

</bundles_post_ra>
